<compile_context>
chip_gen: v7x
topology: tpu7x:2x2x1
jax: 0.10.0
libtpu: 0.0.40
codegen_flags: <defaults>
</compile_context>

<pallas_src>
import jax
import jax.numpy as jnp
from jax.experimental import pallas as pl
from jax.experimental.pallas import tpu as pltpu

K = 9      # conv kernel size
PAD = 4    # "same" padding for k=9


def cnn1d_kernel(x_ref, w_ref, b_ref, o_ref):
    # x_ref: (F, B_TILE)  flattened (channel*length) features on sublanes, batch on lanes
    # w_ref: (1, F)       fused conv (x) linear effective weight
    # b_ref: (1, 1) SMEM  fused bias
    # o_ref: (1, B_TILE)  lane-dense sigmoid(logits)
    logit = jnp.dot(w_ref[...], x_ref[...], preferred_element_type=jnp.float32)
    logit = logit + b_ref[0, 0]
    # Exact sigmoid (pl.reciprocal(approx=True) would also ride the EUP but was kept
    # exact to stay inside the 1e-5 comparison tolerance).
    o_ref[...] = 1.0 / (1.0 + jnp.exp(-logit))


def cnn1d_net(x, w_conv, b_conv, w_lin, b_lin, *, b_tile=512):
    """x: (B, C, L); returns (B, 1, 1) like the PyTorch module."""
    B, C, L = x.shape
    F = C * L

    # ---- fold Conv1d(C->1, k=9, pad=4) and Linear(L->1) into one affine map ----
    # logit[b] = sum_{c,l} x[b,c,l] * W_eff[c,l] + b_eff
    wc = w_conv[0].astype(jnp.float32)                     # (C, K)
    wl = w_lin.reshape(-1).astype(jnp.float32)             # (L,)
    wl_pad = jnp.pad(wl, (PAD, PAD))                       # (L + 2*PAD,), tiny
    w_eff = jnp.zeros((C, L), jnp.float32)
    for k in range(K):                                     # static 9-tap fold, wrapper-side
        w_eff = w_eff + wc[:, k][:, None] * wl_pad[2 * PAD - k: 2 * PAD - k + L]
    b_eff = (b_conv.reshape(()) * jnp.sum(wl) + b_lin.reshape(())).astype(jnp.float32)

    # ---- present activation as (F, B_pad): batch on the lane axis ----
    n_tiles = pl.cdiv(B, b_tile)
    b_pad = n_tiles * b_tile
    xf = x.reshape(B, F).astype(jnp.float32)               # contiguous reshape (free)
    if b_pad != B:
        xf = jnp.pad(xf, ((0, b_pad - B), (0, 0)))         # at most one partial tile
    x_t = xf.T                                             # (F, B_pad); fused with pad under jit

    w_row = w_eff.reshape(1, F)
    b_arr = b_eff.reshape(1, 1)

    out = pl.pallas_call(
        cnn1d_kernel,
        out_shape=jax.ShapeDtypeStruct((1, b_pad), jnp.float32),
        grid=(n_tiles,),
        in_specs=[
            pl.BlockSpec((F, b_tile), lambda i: (0, i)),            # activation tile
            pl.BlockSpec((1, F), lambda i: (0, 0)),                 # fused weight (VMEM-resident)
            pl.BlockSpec(memory_space=pltpu.MemorySpace.SMEM),      # fused scalar bias
        ],
        out_specs=pl.BlockSpec((1, b_tile), lambda i: (0, i)),      # lane-dense output slab
        compiler_params=pltpu.CompilerParams(
            dimension_semantics=("parallel",)),                     # 2 TCs on v7x
    )(x_t, w_row, b_arr)

    return out[0, :B].reshape(B, 1, 1)


def reference_forward(x, w_conv, b_conv, w_lin, b_lin):
    conv = jax.lax.conv_general_dilated(
        x, w_conv, window_strides=(1,), padding=[(PAD, PAD)],
        dimension_numbers=("NCH", "OIH", "NCH"))
    conv = conv + b_conv[None, :, None]                     # (B, 1, L)
    logit = conv @ w_lin.T + b_lin                          # (B, 1, 1)
    return jax.nn.sigmoid(logit)


if __name__ == "__main__":
    B, C_in, L = 2, 4, 16          # linear_input_channels == L == 16
    key = jax.random.PRNGKey(0)
    kx, kw1, kb1, kw2, kb2 = jax.random.split(key, 5)

    x = jax.random.normal(kx, (B, C_in, L), dtype=jnp.float32)

    # Deterministic parameter init (uniform, PyTorch-style fan-in scaling).
    bound_conv = 1.0 / (C_in * K) ** 0.5
    w_conv = jax.random.uniform(kw1, (1, C_in, K), jnp.float32, -bound_conv, bound_conv)
    b_conv = jax.random.uniform(kb1, (1,), jnp.float32, -bound_conv, bound_conv)
    bound_lin = 1.0 / L ** 0.5
    w_lin = jax.random.uniform(kw2, (1, L), jnp.float32, -bound_lin, bound_lin)
    b_lin = jax.random.uniform(kb2, (1,), jnp.float32, -bound_lin, bound_lin)

    fwd = jax.jit(cnn1d_net)
    out = jax.block_until_ready(fwd(x, w_conv, b_conv, w_lin, b_lin))

    ref = reference_forward(x, w_conv, b_conv, w_lin, b_lin)
    assert out.shape == (B, 1, 1), out.shape
    assert jnp.allclose(out, ref, atol=1e-5, rtol=1e-5), (out, ref)
    print("KERNEL_OK")
</pallas_src>

<mosaic_0001>
module attributes {stable_mosaic.version = 11 : i64} {
  func.func @cnn1d_kernel(%arg0: i32, %arg1: memref<64x512xf32, #tpu.memory_space<vmem>>, %arg2: memref<1x64xf32, #tpu.memory_space<vmem>>, %arg3: memref<1x1xf32, #tpu.memory_space<smem>>, %arg4: memref<1x512xf32, #tpu.memory_space<vmem>>) attributes {dimension_semantics = [#tpu.dimension_semantics<parallel>], iteration_bounds = array<i64: 1>, scalar_prefetch = 0 : i64, scratch_operands = 0 : i64, tpu.core_type = #tpu.core_type<tc>, window_params = [{transform_indices = @transform_0, window_bounds = array<i64: 64, 512>}, {pipeline_mode = #tpu.pipeline_mode<synchronous>, transform_indices = @transform_1, window_bounds = array<i64: 1, 64>}, {transform_indices = @transform_2, window_bounds = array<i64: 1, 1>}, {transform_indices = @transform_3, window_bounds = array<i64: 1, 512>}]} {
    %c0 = arith.constant 0 : index
    %c0_0 = arith.constant 0 : index
    %0 = vector.load %arg2[%c0, %c0_0] : memref<1x64xf32, #tpu.memory_space<vmem>>, vector<1x64xf32>
    %c0_1 = arith.constant 0 : index
    %c0_2 = arith.constant 0 : index
    %1 = vector.load %arg1[%c0_1, %c0_2] : memref<64x512xf32, #tpu.memory_space<vmem>>, vector<64x512xf32>
    %cst = arith.constant dense<0.000000e+00> : vector<1x512xf32>
    %2 = tpu.matmul %0, %1, %cst {dimension_numbers = #tpu.dot_dimension_numbers<[1], [0], [0], [1], [0, 0, 1, 1], [], []>} : vector<1x64xf32>, vector<64x512xf32>, vector<1x512xf32> -> vector<1x512xf32>
    %c0_3 = arith.constant 0 : index
    %c0_4 = arith.constant 0 : index
    %3 = memref.load %arg3[%c0_3, %c0_4] : memref<1x1xf32, #tpu.memory_space<smem>>
    %4 = vector.broadcast %3 : f32 to vector<1x512xf32>
    %5 = arith.addf %2, %4 : vector<1x512xf32>
    %cst_5 = arith.constant 0.000000e+00 : f32
    %6 = vector.broadcast %cst_5 : f32 to vector<1x512xf32>
    %7 = arith.subf %6, %5 : vector<1x512xf32>
    %8 = math.exp %7 : vector<1x512xf32>
    %cst_6 = arith.constant 1.000000e+00 : f32
    %9 = vector.broadcast %cst_6 : f32 to vector<1x512xf32>
    %10 = arith.addf %9, %8 : vector<1x512xf32>
    %cst_7 = arith.constant 1.000000e+00 : f32
    %11 = vector.broadcast %cst_7 : f32 to vector<1x512xf32>
    %12 = arith.divf %11, %10 : vector<1x512xf32>
    %c0_8 = arith.constant 0 : index
    %c0_9 = arith.constant 0 : index
    %13 = vector.load %arg4[%c0_8, %c0_9] : memref<1x512xf32, #tpu.memory_space<vmem>>, vector<1x512xf32>
    tpu.vector_store %arg4[%c0_8, %c0_9], %12 {strides = array<i32>} : memref<1x512xf32, #tpu.memory_space<vmem>>, vector<1x512xf32>,
    return
  }
  func.func @transform_0(%arg0: i32) -> (i32, i32) {
    %c0_i32 = arith.constant 0 : i32
    %c0_i32_0 = arith.constant 0 : i32
    return %c0_i32, %arg0 : i32, i32
  }
  func.func @transform_1(%arg0: i32) -> (i32, i32) {
    %c0_i32 = arith.constant 0 : i32
    %c0_i32_0 = arith.constant 0 : i32
    %c0_i32_1 = arith.constant 0 : i32
    return %c0_i32, %c0_i32_0 : i32, i32
  }
  func.func @transform_2(%arg0: i32) -> (i32, i32) {
    %c0_i32 = arith.constant 0 : i32
    %c0_i32_0 = arith.constant 0 : i32
    %c0_i32_1 = arith.constant 0 : i32
    return %c0_i32, %c0_i32_0 : i32, i32
  }
  func.func @transform_3(%arg0: i32) -> (i32, i32) {
    %c0_i32 = arith.constant 0 : i32
    %c0_i32_0 = arith.constant 0 : i32
    return %c0_i32, %arg0 : i32, i32
  }
}

</mosaic_0001>

<bundles_post_ra>
// kernel: cnn1d_net.1
= control target key start
LH: loop header
LB: loop body
LE: loop exit
PB: predicated region body
PF: predicated region fallthrough
CT: control target
= control target key end

     0   :  { %v310_v3 = vmov 0.0   ;;  %vm50_vm0 = vcmask 523264   ;;  %s437_s0 = inlined_call_operand.vmem [shape: f32[64,512], index: 0, kind: input, shape index: {}]   ;;  %s438_s1 = inlined_call_operand.vmem [shape: f32[1,64], index: 1, kind: input, shape index: {}]   ;;  %s439_s2 = inlined_call_operand.<no memory space> [shape: f32[1,1], index: 2, kind: input, shape index: {}]   ;;  %s440_s3 = inlined_call_operand.vmem [shape: f32[1,512], index: 3, kind: output, shape index: {}]  }
   0x1   :  { %v17_v0 = vld [vmem:[%s437_s0 + $0x8] sm:$0xff]  ;;  %v19_v2 = vld [vmem:[%s437_s0 + $0x18] sm:$0xff]  ;;  %118 = vmatprep.mubr.f32.mxu0 %v310_v3  ;;  %189 = vmatprep.mubr.f32.mxu1 %v310_v3  ;;  %v16_v6 = vld [vmem:[%s437_s0] sm:$0xff]  ;;  %v49_v50 = vstv %s439_s2 }
   0x2   :  { %v21_v1 = vld [vmem:[%s437_s0 + $0x28] sm:$0xff]  ;;  %v23_v5 = vld [vmem:[%s437_s0 + $0x38] sm:$0xff]  ;;  %v20_v7 = vld [vmem:[%s437_s0 + $0x20] sm:$0xff] }
   0x3   :  { %v260_v4 = vpack.c.bf16 %v21_v1, %v17_v0  ;;  %v276_v8 = vpack.c.bf16 %v23_v5, %v19_v2  ;;  %v262_v9 = vpack.c.bf16 %v20_v7, %v16_v6  ;;  %v18_v10 = vld [vmem:[%s437_s0 + $0x10] sm:$0xff]  ;;  %v25_v12 = vld [vmem:[%s437_s0 + $0x48] sm:$0xff]  ;;  %v27_v15 = vld [vmem:[%s437_s0 + $0x58] sm:$0xff] }
   0x4   :  { %v22_v11 = vld [vmem:[%s437_s0 + $0x30] sm:$0xff]  ;;  %v29_v14 = vld [vmem:[%s437_s0 + $0x68] sm:$0xff]  ;;  %v31_v16 = vld [vmem:[%s437_s0 + $0x78] sm:$0xff] }
   0x5   :  { %261 = vmatprep.subr.bf16.mxu0 %v260_v4  ;;  %v278_v13 = vpack.c.bf16 %v22_v11, %v18_v10  ;;  %277 = vmatprep.subr.bf16.mxu1 %v276_v8  ;;  %v264_v17 = vpack.c.bf16 %v29_v14, %v25_v12  ;;  %v280_v18 = vpack.c.bf16 %v31_v16, %v27_v15  ;;  %v24_v19 = vld [vmem:[%s437_s0 + $0x40] sm:$0xff]  ;;  %v26_v21 = vld [vmem:[%s437_s0 + $0x50] sm:$0xff]  ;;  %v33_v24 = vld [vmem:[%s437_s0 + $0x88] sm:$0xff]  ;;  %v311_v11 = vmov 1966171168  }
   0x6   :  { %263 = vmatpush1.bf16.msra.mxu0 %v262_v9  ;;  %v28_v20 = vld [vmem:[%s437_s0 + $0x60] sm:$0xff]  ;;  %v30_v23 = vld [vmem:[%s437_s0 + $0x70] sm:$0xff]  ;;  %v37_v25 = vld [vmem:[%s437_s0 + $0xa8] sm:$0xff]  ;;  %v227_v12 = vunpack.c.l.s4 %v311_v11 }
   0x7   :  { %279 = vmatpush1.bf16.msra.mxu1 %v278_v13  ;;  %v266_v22 = vpack.c.bf16 %v28_v20, %v24_v19  ;;  %265 = vmatprep.subr.bf16.mxu0 %v264_v17  ;;  %v282_v26 = vpack.c.bf16 %v30_v23, %v26_v21  ;;  %v268_v27 = vpack.c.bf16 %v37_v25, %v33_v24  ;;  %v35_v28 = vld [vmem:[%s437_s0 + $0x98] sm:$0xff]  ;;  %v32_v30 = vld [vmem:[%s437_s0 + $0x80] sm:$0xff]  ;;  %v34_v33 = vld [vmem:[%s437_s0 + $0x90] sm:$0xff]  ;;  %v229_v13 = vlaneseq }
   0x8   :  { %281 = vmatprep.subr.bf16.mxu1 %v280_v18  ;;  %v39_v29 = vld [vmem:[%s437_s0 + $0xb8] sm:$0xff]  ;;  %v36_v32 = vld [vmem:[%s437_s0 + $0xa0] sm:$0xff]  ;;  %v38_v34 = vld [vmem:[%s437_s0 + $0xb0] sm:$0xff]  ;;  %v228_v14 = vunpack.c.0.s8 %v227_v12 }
   0x9   :  { %v284_v31 = vpack.c.bf16 %v39_v29, %v35_v28  ;;  %v270_v35 = vpack.c.bf16 %v36_v32, %v32_v30  ;;  %v41_v36 = vld [vmem:[%s437_s0 + $0xc8] sm:$0xff]  ;;  %v43_v38 = vld [vmem:[%s437_s0 + $0xd8] sm:$0xff]  ;;  %v286_v39 = vpack.c.bf16 %v38_v34, %v34_v33  ;;  %v40_v42 = vld [vmem:[%s437_s0 + $0xc0] sm:$0xff]  ;;  %v230_v15 = vshrl.u32 %v229_v13, 7 }
   0xa   :  { %267 = vmatpush1.bf16.msra.mxu0 %v266_v22  ;;  %v45_v37 = vld [vmem:[%s437_s0 + $0xe8] sm:$0xff]  ;;  %v47_v41 = vld [vmem:[%s437_s0 + $0xf8] sm:$0xff]  ;;  %v44_v43 = vld [vmem:[%s437_s0 + $0xe0] sm:$0xff]  ;;  %vm251_vm1 = vcmp.lt.s32.totalorder %v229_v13, 512 }
   0xb   :  { %283 = vmatpush1.bf16.msra.mxu1 %v282_v26  ;;  %269 = vmatprep.subr.bf16.mxu0 %v268_v27  ;;  %v272_v40 = vpack.c.bf16 %v45_v37, %v41_v36  ;;  %v288_v44 = vpack.c.bf16 %v47_v41, %v43_v38  ;;  %v42_v45 = vld [vmem:[%s437_s0 + $0xd0] sm:$0xff]  ;;  %v274_v47 = vpack.c.bf16 %v44_v43, %v40_v42  ;;  %v15_v49 = vld [vmem:[%s438_s1] sm:$0x1] }
   0xc   :  { %285 = vmatprep.subr.bf16.mxu1 %v284_v31  ;;  %v46_v46 = vld [vmem:[%s437_s0 + $0xf0] sm:$0xff]  ;;  %v231_v18 = vsub.s32 %v228_v14, %v230_v15 }
   0xd   :  { %v290_v48 = vpack.c.bf16 %v46_v46, %v42_v45 }
   0xe   :  { %271 = vmatpush1.bf16.msra.mxu0 %v270_v35 }
   0xf   :  { %287 = vmatpush1.bf16.msra.mxu1 %v286_v39  ;;  %273 = vmatprep.subr.bf16.mxu0 %v272_v40 }
  0x10   :  { %289 = vmatprep.subr.bf16.mxu1 %v288_v44 }
  0x12   :  { %275 = vmatpush1.bf16.msra.mxu0 %v274_v47 }
  0x13   :  { %291 = vmatpush1.bf16.msra.mxu1 %v290_v48 }
  0x15   :  { %258 = vmatmul.mubr.msk.f32.vlgmr.msra.gmra.mrb[0].mxu0 %vm50_vm0, %v15_v49 }
  0x16   :  { %259 = vmatmul.mubr.msk.f32.vlgmr.msra.gmra.mrb[0].mxu1 %vm50_vm0, %v15_v49 }
  0xe8   :  { %v120_v51 = vpop.f32.mrb[0].mxu0 }
  0xe9   :  { %v121_v52 = vadd.f32 %v120_v51, %v49_v50  ;;  %v191_v53 = vpop.f32.mrb[0].mxu1  ;;  %v122_v54 = vpop.f32.mrb[1].mxu0 }
  0xea   :  { %v192_v55 = vadd.f32 %v191_v53, %v49_v50  ;;  %v123_v56 = vadd.f32 %v122_v54, %v49_v50  ;;  %v193_v57 = vpop.f32.mrb[1].mxu1 }
  0xeb   :  { %v196_v58 = vsub.f32 0.0, %v121_v52  ;;  %v194_v59 = vadd.f32 %v193_v57, %v49_v50 }
  0xec   :  { %v198_v60 = vsub.f32 0.0, %v192_v55  ;;  %v197_v61 = vsub.f32 0.0, %v123_v56 }
  0xed   :  { %v200_v62 = vmul.f32 1.442695, %v196_v58  ;;  %v199_v63 = vsub.f32 0.0, %v194_v59 }
  0xee   :  { %v204_v0 = vmul.f32 1.442695, %v198_v60  ;;  %v202_v1 = vmul.f32 1.442695, %v197_v61 }
  0xef   :  { %294 = vpow2.f32 %v200_v62  ;;  %v206_v2 = vmul.f32 1.442695, %v199_v63 }
  0xf0   :  { %296 = vpow2.f32 %v204_v0 }
  0xf1   :  { %298 = vpow2.f32 %v202_v1 }
  0xf2   :  { %300 = vpow2.f32 %v206_v2 }
  0xf9   :  { %v295_v3 = vpop.eup %294 }
  0xfa   :  { %v297_v4 = vpop.eup %296  ;;  %v208_v5 = vadd.f32 1.0, %v295_v3 }
  0xfb   :  { %v299_v6 = vpop.eup %298  ;;  %v210_v7 = vadd.f32 1.0, %v297_v4 }
  0xfc   :  { %v301_v8 = vpop.eup %300  ;;  %302 = vrcp.f32 %v208_v5  ;;  %v209_v9 = vadd.f32 1.0, %v299_v6 }
  0xfd   :  { %304 = vrcp.f32 %v210_v7  ;;  %v211_v10 = vadd.f32 1.0, %v301_v8 }
  0xfe   :  { %306 = vrcp.f32 %v209_v9 }
  0xff   :  { %308 = vrcp.f32 %v211_v10 }
 0x106   :  { %v303_v16 = vpop.eup %302 }
 0x107   :  { %v305_v17 = vpop.eup %304 }
 0x108   :  { %v307_v19 = vpop.eup %306 }
 0x109   :  { %v309_v20 = vpop.eup %308  ;;  %v224_v21 = vcombine.low %v303_v16, %v307_v19 }
 0x10a   :  { %v225_v22 = vcombine.low %v305_v17, %v309_v20 }
 0x10b   :  { %v232_v23 = vrot.slane %v224_v21, %v231_v18 }
 0x10c   :  { %v239_v24 = vrot.slane %v225_v22, %v231_v18 }
 0x10e   :  { %v240_v25 = vcombine.low %v232_v23, %v239_v24 }
 0x110   :  { %v247_v26 = vrot.slane %v240_v25, %v231_v18 }
 0x112   :  { %253 = vst.msk [vmem:[%s440_s3] sm:$0xf] %vm251_vm1, %v247_v26 }

</bundles_post_ra>
